<compile_context>
chip_gen: v7x
topology: tpu7x:2x2x1
jax: 0.10.0
libtpu: 0.0.40
codegen_flags: <defaults>
</compile_context>

<pallas_src>
import functools

import jax
import jax.numpy as jnp
from jax.experimental import pallas as pl
from jax.experimental.pallas import tpu as pltpu


def _round_up(x, m):
    return (x + m - 1) // m * m


def _vmem_limit_clamp_bytes():
    """Physical-VMEM-aware clamp for vmem_limit_bytes."""
    try:
        kind = jax.devices()[0].device_kind.lower()
    except Exception:  # pragma: no cover - defensive
        kind = ""
    if ("v4" in kind) or ("v5" in kind) or ("v6" in kind):
        return 100 * 1024 * 1024          # 128 MiB physical -> leave headroom
    if "v7" in kind:
        return 48 * 1024 * 1024           # 64 MiB per-TC physical
    return 32 * 1024 * 1024               # unknown / older: stay at default


def _mlp_kernel(x_ref, w1_ref, b1_ref, w2_ref, b2_ref, o_ref, *, gelu_approximate):
    # fc1: (TM, Hp) @ (Hp, Mp) + (1, Mp); operands at weight dtype, f32 accum.
    h = jnp.dot(x_ref[...].astype(w1_ref.dtype), w1_ref[...],
                preferred_element_type=jnp.float32)
    h = h + b1_ref[...]                      # b1 is already f32
    # GELU: tanh approximation hits the EUP slot (co-issues with vmatmul);
    # approximate=False gives torch's exact-erf default if bit fidelity matters.
    h = jax.nn.gelu(h, approximate=gelu_approximate)
    # dropout: identity at inference
    h = h.astype(w2_ref.dtype)               # feed MXU at native operand rate
    # fc2: (TM, Mp) @ (Mp, Hp) + (1, Hp)
    out = jnp.dot(h, w2_ref[...], preferred_element_type=jnp.float32)
    out = out + b2_ref[...]                   # b2 is already f32
    # dropout: identity at inference
    o_ref[...] = out.astype(o_ref.dtype)


@functools.partial(jax.jit, static_argnames=("tm", "gelu_approximate"))
def mlp_forward(x, w1, b1, w2, b2, *, tm=512, gelu_approximate=True):
    """x: (B, S, H); w1: (H, M); b1: (M,); w2: (M, H); b2: (H,). Returns (B, S, H)."""
    B, S, H = x.shape
    M = w1.shape[1]
    N = B * S

    out_dtype = x.dtype
    w_dtype = w1.dtype
    w_isz = jnp.dtype(w_dtype).itemsize
    o_isz = jnp.dtype(out_dtype).itemsize

    # ---- tile / padding sizes (lane-dense, (8,128)-legal) -----------------
    Hp = _round_up(H, 128)                    # lane-dense last dim
    Mp = _round_up(M, 128)                    # lane-dense intermediate dim
    sub = {4: 8, 2: 16, 1: 32}.get(w_isz, 8)  # sublane multiple of compute dtype
    tm = max(sub, min(int(tm), _round_up(N, sub)))
    tm = _round_up(tm, sub)
    if tm >= 256:                             # MXU-friendly tile rows
        tm = (tm // 256) * 256
    Np = _round_up(N, tm)

    # ---- wrapper-side layout prep (cast + pad) ----------------------------
    x2d = x.reshape(N, H).astype(w_dtype)     # halves x DMA bytes for bf16 weights
    if Hp != H:
        x2d = jnp.pad(x2d, ((0, 0), (0, Hp - H)))
        w1 = jnp.pad(w1, ((0, Hp - H), (0, 0)))
        w2 = jnp.pad(w2, ((0, 0), (0, Hp - H)))
        b2 = jnp.pad(b2, (0, Hp - H))
    if Mp != M:
        w1 = jnp.pad(w1, ((0, 0), (0, Mp - M)))
        b1 = jnp.pad(b1, (0, Mp - M))
        w2 = jnp.pad(w2, ((0, Mp - M), (0, 0)))
    if Np != N:
        x2d = jnp.pad(x2d, ((0, Np - N), (0, 0)))

    b1_2d = b1.reshape(1, Mp).astype(jnp.float32)   # pre-cast: no in-kernel cast
    b2_2d = b2.reshape(1, Hp).astype(jnp.float32)

    grid = (Np // tm,)

    # ---- VMEM budget (weights single-buffered, x/out double-buffered) -----
    vmem_est = (
        2 * Hp * Mp * w_isz            # resident fc1 + fc2 weights (1 buffer each)
        + (Mp + Hp) * 4                # f32 biases
        + 2 * tm * Hp * w_isz          # double-buffered x tile
        + 2 * tm * Hp * o_isz          # double-buffered out tile
        + 2 * tm * Mp * 4              # f32 fc1 intermediate + slack
        + tm * Hp * 4                  # f32 fc2 result before store-cast
    )
    vmem_limit = int(min(max(int(1.25 * vmem_est), 32 * 1024 * 1024),
                         _vmem_limit_clamp_bytes()))

    cost = pl.CostEstimate(
        flops=4 * Np * Hp * Mp,                       # two matmuls
        transcendentals=Np * Mp,                      # GELU
        bytes_accessed=(x2d.size * w_isz + w1.size * w_isz + w2.size * w_isz
                        + b1_2d.size * 4 + b2_2d.size * 4
                        + Np * Hp * o_isz),
    )

    kernel = functools.partial(_mlp_kernel, gelu_approximate=gelu_approximate)

    out2d = pl.pallas_call(
        kernel,
        out_shape=jax.ShapeDtypeStruct((Np, Hp), out_dtype),
        grid=grid,
        in_specs=[
            pl.BlockSpec((tm, Hp), lambda i: (i, 0)),                 # x tile (pipelined)
            pl.BlockSpec((Hp, Mp), lambda i: (0, 0),
                         pipeline_mode=pl.Buffered(1)),               # w1 resident, 1 buffer
            pl.BlockSpec((1, Mp), lambda i: (0, 0),
                         pipeline_mode=pl.Buffered(1)),               # b1 resident, 1 buffer
            pl.BlockSpec((Mp, Hp), lambda i: (0, 0),
                         pipeline_mode=pl.Buffered(1)),               # w2 resident, 1 buffer
            pl.BlockSpec((1, Hp), lambda i: (0, 0),
                         pipeline_mode=pl.Buffered(1)),               # b2 resident, 1 buffer
        ],
        out_specs=pl.BlockSpec((tm, Hp), lambda i: (i, 0)),
        compiler_params=pltpu.CompilerParams(
            dimension_semantics=("parallel",),        # megacore / 2-TC sharding
            vmem_limit_bytes=vmem_limit,
        ),
        cost_estimate=cost,
    )(x2d, w1, b1_2d, w2, b2_2d)

    # TODO(synk): for configs where both weight matrices exceed per-TC VMEM
    # (e.g. ViT-L f32 on v7x), switch to a K-tiled streaming scheme with an f32
    # accumulator scratch instead of whole-weight residency.
    return out2d[:N, :H].reshape(B, S, H)


def _xavier_uniform(key, fan_in, fan_out, dtype=jnp.float32):
    # matches torch.nn.init.xavier_uniform_ (gain=1)
    limit = jnp.sqrt(6.0 / (fan_in + fan_out))
    return jax.random.uniform(key, (fan_in, fan_out), dtype=dtype,
                              minval=-limit, maxval=limit)


if __name__ == "__main__":
    # config.hidden_size = 32, config.transformer['mlp_dim'] = 64
    B, S, H, M = 2, 8, 32, 64

    key = jax.random.PRNGKey(0)
    kx, kw1, kb1, kw2, kb2 = jax.random.split(key, 5)

    x = jax.random.normal(kx, (B, S, H), dtype=jnp.float32)

    # Deterministic init mirroring Mlp._init_weights:
    #   xavier_uniform for weights, normal(std=1e-6) for biases.
    w1 = _xavier_uniform(kw1, H, M)                      # fc1 weight, stored (in, out)
    b1 = 1e-6 * jax.random.normal(kb1, (M,), jnp.float32)
    w2 = _xavier_uniform(kw2, M, H)                      # fc2 weight, stored (in, out)
    b2 = 1e-6 * jax.random.normal(kb2, (H,), jnp.float32)

    x2 = x.reshape(-1, H)

    # Fast path: tanh-GELU (default), checked against a matching JAX reference.
    out = jax.block_until_ready(mlp_forward(x, w1, b1, w2, b2))
    ref = (jax.nn.gelu(x2 @ w1 + b1, approximate=True) @ w2 + b2).reshape(B, S, H)
    assert jnp.allclose(out, ref, atol=1e-5, rtol=1e-5), "mismatch (tanh GELU)"

    # Fidelity path: exact erf GELU (torch.nn.functional.gelu default).
    out_exact = jax.block_until_ready(
        mlp_forward(x, w1, b1, w2, b2, gelu_approximate=False))
    ref_exact = (jax.nn.gelu(x2 @ w1 + b1, approximate=False) @ w2 + b2).reshape(B, S, H)
    assert jnp.allclose(out_exact, ref_exact, atol=1e-5, rtol=1e-5), "mismatch (erf GELU)"

    # TODO(synk): training-mode dropout (RNG masking) is not implemented; the
    # kernel implements eval/inference semantics where Dropout is the identity.

    print("KERNEL_OK")
</pallas_src>

<mosaic_0001>
module attributes {stable_mosaic.version = 11 : i64} {
  func.func @_mlp_kernel(%arg0: i32, %arg1: memref<16x128xf32, #tpu.memory_space<vmem>>, %arg2: memref<128x128xf32, #tpu.memory_space<vmem>>, %arg3: memref<1x128xf32, #tpu.memory_space<vmem>>, %arg4: memref<128x128xf32, #tpu.memory_space<vmem>>, %arg5: memref<1x128xf32, #tpu.memory_space<vmem>>, %arg6: memref<16x128xf32, #tpu.memory_space<vmem>>) attributes {dimension_semantics = [#tpu.dimension_semantics<parallel>], iteration_bounds = array<i64: 1>, scalar_prefetch = 0 : i64, scratch_operands = 0 : i64, tpu.core_type = #tpu.core_type<tc>, window_params = [{transform_indices = @transform_0, window_bounds = array<i64: 16, 128>}, {pipeline_mode = #tpu.pipeline_mode<synchronous>, transform_indices = @transform_1, window_bounds = array<i64: 128, 128>}, {pipeline_mode = #tpu.pipeline_mode<synchronous>, transform_indices = @transform_2, window_bounds = array<i64: 1, 128>}, {pipeline_mode = #tpu.pipeline_mode<synchronous>, transform_indices = @transform_3, window_bounds = array<i64: 128, 128>}, {pipeline_mode = #tpu.pipeline_mode<synchronous>, transform_indices = @transform_4, window_bounds = array<i64: 1, 128>}, {transform_indices = @transform_5, window_bounds = array<i64: 16, 128>}]} {
    %c0 = arith.constant 0 : index
    %c0_0 = arith.constant 0 : index
    %0 = vector.load %arg1[%c0, %c0_0] : memref<16x128xf32, #tpu.memory_space<vmem>>, vector<16x128xf32>
    %c0_1 = arith.constant 0 : index
    %c0_2 = arith.constant 0 : index
    %1 = vector.load %arg2[%c0_1, %c0_2] : memref<128x128xf32, #tpu.memory_space<vmem>>, vector<128x128xf32>
    %cst = arith.constant dense<0.000000e+00> : vector<16x128xf32>
    %2 = tpu.matmul %0, %1, %cst {dimension_numbers = #tpu.dot_dimension_numbers<[1], [0], [0], [1], [0, 0, 1, 1], [], []>} : vector<16x128xf32>, vector<128x128xf32>, vector<16x128xf32> -> vector<16x128xf32>
    %c0_3 = arith.constant 0 : index
    %c0_4 = arith.constant 0 : index
    %3 = vector.load %arg3[%c0_3, %c0_4] : memref<1x128xf32, #tpu.memory_space<vmem>>, vector<1x128xf32>
    %4 = vector.broadcast %3 : vector<1x128xf32> to vector<16x128xf32>
    %5 = arith.addf %2, %4 : vector<16x128xf32>
    %6 = arith.mulf %5, %5 : vector<16x128xf32>
    %7 = arith.mulf %5, %6 : vector<16x128xf32>
    %cst_5 = arith.constant 4.471500e-02 : f32
    %8 = vector.broadcast %cst_5 : f32 to vector<16x128xf32>
    %9 = arith.mulf %8, %7 : vector<16x128xf32>
    %10 = arith.addf %5, %9 : vector<16x128xf32>
    %cst_6 = arith.constant 0.797884583 : f32
    %11 = vector.broadcast %cst_6 : f32 to vector<16x128xf32>
    %12 = arith.mulf %11, %10 : vector<16x128xf32>
    %13 = math.tanh %12 : vector<16x128xf32>
    %cst_7 = arith.constant 1.000000e+00 : f32
    %14 = vector.broadcast %cst_7 : f32 to vector<16x128xf32>
    %15 = arith.addf %14, %13 : vector<16x128xf32>
    %cst_8 = arith.constant 5.000000e-01 : f32
    %16 = vector.broadcast %cst_8 : f32 to vector<16x128xf32>
    %17 = arith.mulf %16, %15 : vector<16x128xf32>
    %18 = arith.mulf %5, %17 : vector<16x128xf32>
    %c0_9 = arith.constant 0 : index
    %c0_10 = arith.constant 0 : index
    %19 = vector.load %arg4[%c0_9, %c0_10] : memref<128x128xf32, #tpu.memory_space<vmem>>, vector<128x128xf32>
    %cst_11 = arith.constant dense<0.000000e+00> : vector<16x128xf32>
    %20 = tpu.matmul %18, %19, %cst_11 {dimension_numbers = #tpu.dot_dimension_numbers<[1], [0], [0], [1], [0, 0, 1, 1], [], []>} : vector<16x128xf32>, vector<128x128xf32>, vector<16x128xf32> -> vector<16x128xf32>
    %c0_12 = arith.constant 0 : index
    %c0_13 = arith.constant 0 : index
    %21 = vector.load %arg5[%c0_12, %c0_13] : memref<1x128xf32, #tpu.memory_space<vmem>>, vector<1x128xf32>
    %22 = vector.broadcast %21 : vector<1x128xf32> to vector<16x128xf32>
    %23 = arith.addf %20, %22 : vector<16x128xf32>
    %c0_14 = arith.constant 0 : index
    %c0_15 = arith.constant 0 : index
    %24 = vector.load %arg6[%c0_14, %c0_15] : memref<16x128xf32, #tpu.memory_space<vmem>>, vector<16x128xf32>
    tpu.vector_store %arg6[%c0_14, %c0_15], %23 {strides = array<i32>} : memref<16x128xf32, #tpu.memory_space<vmem>>, vector<16x128xf32>,
    return
  }
  func.func @transform_0(%arg0: i32) -> (i32, i32) {
    %c0_i32 = arith.constant 0 : i32
    %c0_i32_0 = arith.constant 0 : i32
    return %arg0, %c0_i32 : i32, i32
  }
  func.func @transform_1(%arg0: i32) -> (i32, i32) {
    %c0_i32 = arith.constant 0 : i32
    %c0_i32_0 = arith.constant 0 : i32
    %c0_i32_1 = arith.constant 0 : i32
    return %c0_i32, %c0_i32_0 : i32, i32
  }
  func.func @transform_2(%arg0: i32) -> (i32, i32) {
    %c0_i32 = arith.constant 0 : i32
    %c0_i32_0 = arith.constant 0 : i32
    %c0_i32_1 = arith.constant 0 : i32
    return %c0_i32, %c0_i32_0 : i32, i32
  }
  func.func @transform_3(%arg0: i32) -> (i32, i32) {
    %c0_i32 = arith.constant 0 : i32
    %c0_i32_0 = arith.constant 0 : i32
    %c0_i32_1 = arith.constant 0 : i32
    return %c0_i32, %c0_i32_0 : i32, i32
  }
  func.func @transform_4(%arg0: i32) -> (i32, i32) {
    %c0_i32 = arith.constant 0 : i32
    %c0_i32_0 = arith.constant 0 : i32
    %c0_i32_1 = arith.constant 0 : i32
    return %c0_i32, %c0_i32_0 : i32, i32
  }
  func.func @transform_5(%arg0: i32) -> (i32, i32) {
    %c0_i32 = arith.constant 0 : i32
    %c0_i32_0 = arith.constant 0 : i32
    return %arg0, %c0_i32 : i32, i32
  }
}

</mosaic_0001>

<bundles_post_ra>
// kernel: mlp_forward.1
= control target key start
LH: loop header
LB: loop body
LE: loop exit
PB: predicated region body
PF: predicated region fallthrough
CT: control target
= control target key end

     0   :  { %s562_s1 = inlined_call_operand.vmem [shape: f32[128,128], index: 1, kind: input, shape index: {}]   ;;  %s563_s0 = inlined_call_operand.vmem [shape: f32[16,128], index: 0, kind: input, shape index: {}]   ;;  %s564_s3 = inlined_call_operand.vmem [shape: f32[128,128], index: 3, kind: input, shape index: {}]   ;;  %s565_s2 = inlined_call_operand.vmem [shape: f32[1,128], index: 2, kind: input, shape index: {}]   ;;  %s566_s4 = inlined_call_operand.vmem [shape: f32[1,128], index: 4, kind: input, shape index: {}]   ;;  %s567_s5 = inlined_call_operand.vmem [shape: f32[16,128], index: 5, kind: output, shape index: {}]  }
   0x1   :  { %v22_v0 = vld [vmem:[%s562_s1] sm:$0xff]  ;;  %v23_v1 = vld [vmem:[%s562_s1 + $0x8] sm:$0xff]  ;;  %v24_v2 = vld [vmem:[%s562_s1 + $0x10] sm:$0xff] }
   0x2   :  { %v350_v3 = vpack.c.bf16 %v23_v1, %v22_v0  ;;  %v25_v4 = vld [vmem:[%s562_s1 + $0x18] sm:$0xff]  ;;  %v26_v6 = vld [vmem:[%s562_s1 + $0x20] sm:$0xff]  ;;  %v27_v7 = vld [vmem:[%s562_s1 + $0x28] sm:$0xff] }
   0x3   :  { %v354_v5 = vpack.c.bf16 %v25_v4, %v24_v2  ;;  %v358_v8 = vpack.c.bf16 %v27_v7, %v26_v6  ;;  %v20_v9 = vld [vmem:[%s563_s0] sm:$0xff]  ;;  %v28_v10 = vld [vmem:[%s562_s1 + $0x30] sm:$0xff]  ;;  %v29_v11 = vld [vmem:[%s562_s1 + $0x38] sm:$0xff] }
   0x4   :  { %351 = vmatprep.subr.bf16.mxu0 %v350_v3  ;;  %312 = vmatprep.mubr.f32.mxu0 %v20_v9  ;;  %v362_v12 = vpack.c.bf16 %v29_v11, %v28_v10  ;;  %v30_v13 = vld [vmem:[%s562_s1 + $0x40] sm:$0xff]  ;;  %v31_v14 = vld [vmem:[%s562_s1 + $0x48] sm:$0xff]  ;;  %v32_v16 = vld [vmem:[%s562_s1 + $0x50] sm:$0xff] }
   0x5   :  { %353 = vmatpush3.bf16.msra.mxu0 %v350_v3  ;;  %v366_v15 = vpack.c.bf16 %v31_v14, %v30_v13  ;;  %v33_v17 = vld [vmem:[%s562_s1 + $0x58] sm:$0xff]  ;;  %v34_v19 = vld [vmem:[%s562_s1 + $0x60] sm:$0xff]  ;;  %v35_v20 = vld [vmem:[%s562_s1 + $0x68] sm:$0xff] }
   0x6   :  { %355 = vmatprep.subr.bf16.mxu0 %v354_v5  ;;  %v370_v18 = vpack.c.bf16 %v33_v17, %v32_v16  ;;  %v374_v21 = vpack.c.bf16 %v35_v20, %v34_v19  ;;  %v36_v22 = vld [vmem:[%s562_s1 + $0x70] sm:$0xff]  ;;  %v37_v23 = vld [vmem:[%s562_s1 + $0x78] sm:$0xff]  ;;  %v21_v25 = vld [vmem:[%s563_s0 + $0x8] sm:$0xff] }
   0x7   :  { %v378_v24 = vpack.c.bf16 %v37_v23, %v36_v22  ;;  %v138_v26 = vld [vmem:[%s564_s3] sm:$0xff]  ;;  %v139_v27 = vld [vmem:[%s564_s3 + $0x8] sm:$0xff]  ;;  %v140_v29 = vld [vmem:[%s564_s3 + $0x10] sm:$0xff] }
   0x8   :  { %v382_v28 = vpack.c.bf16 %v139_v27, %v138_v26  ;;  %v141_v30 = vld [vmem:[%s564_s3 + $0x18] sm:$0xff]  ;;  %v142_v32 = vld [vmem:[%s564_s3 + $0x20] sm:$0xff]  ;;  %v143_v33 = vld [vmem:[%s564_s3 + $0x28] sm:$0xff] }
   0x9   :  { %357 = vmatpush3.bf16.msra.mxu0 %v354_v5  ;;  %v386_v31 = vpack.c.bf16 %v141_v30, %v140_v29  ;;  %v390_v34 = vpack.c.bf16 %v143_v33, %v142_v32  ;;  %v144_v35 = vld [vmem:[%s564_s3 + $0x30] sm:$0xff]  ;;  %v145_v36 = vld [vmem:[%s564_s3 + $0x38] sm:$0xff]  ;;  %v146_v38 = vld [vmem:[%s564_s3 + $0x40] sm:$0xff] }
   0xa   :  { %359 = vmatprep.subr.bf16.mxu0 %v358_v8  ;;  %383 = vmatprep.subr.bf16.mxu1 %v382_v28  ;;  %v394_v37 = vpack.c.bf16 %v145_v36, %v144_v35  ;;  %v147_v39 = vld [vmem:[%s564_s3 + $0x48] sm:$0xff]  ;;  %v148_v40 = vld [vmem:[%s564_s3 + $0x50] sm:$0xff]  ;;  %v149_v42 = vld [vmem:[%s564_s3 + $0x58] sm:$0xff] }
   0xb   :  { %385 = vmatpush3.bf16.msra.mxu1 %v382_v28  ;;  %v398_v41 = vpack.c.bf16 %v147_v39, %v146_v38  ;;  %v402_v43 = vpack.c.bf16 %v149_v42, %v148_v40  ;;  %v150_v44 = vld [vmem:[%s564_s3 + $0x60] sm:$0xff]  ;;  %v151_v45 = vld [vmem:[%s564_s3 + $0x68] sm:$0xff]  ;;  %v152_v47 = vld [vmem:[%s564_s3 + $0x70] sm:$0xff] }
   0xc   :  { %387 = vmatprep.subr.bf16.mxu1 %v386_v31  ;;  %v406_v46 = vpack.c.bf16 %v151_v45, %v150_v44  ;;  %v153_v48 = vld [vmem:[%s564_s3 + $0x78] sm:$0xff]  ;;  %v242_v50 = vld [vmem:[%s565_s2] ss:$0 sm:$0xff] }
   0xd   :  { %361 = vmatpush3.bf16.msra.mxu0 %v358_v8  ;;  %v410_v49 = vpack.c.bf16 %v153_v48, %v152_v47  ;;  %v243_v9 = vld [vmem:[%s566_s4] ss:$0 sm:$0xff] }
   0xe   :  { %363 = vmatprep.subr.bf16.mxu0 %v362_v12 }
   0xf   :  { %389 = vmatpush3.bf16.msra.mxu1 %v386_v31 }
  0x10   :  { %391 = vmatprep.subr.bf16.mxu1 %v390_v34 }
  0x11   :  { %365 = vmatpush3.bf16.msra.mxu0 %v362_v12 }
  0x12   :  { %367 = vmatprep.subr.bf16.mxu0 %v366_v15 }
  0x13   :  { %393 = vmatpush3.bf16.msra.mxu1 %v390_v34 }
  0x14   :  { %395 = vmatprep.subr.bf16.mxu1 %v394_v37 }
  0x15   :  { %369 = vmatpush3.bf16.msra.mxu0 %v366_v15 }
  0x16   :  { %371 = vmatprep.subr.bf16.mxu0 %v370_v18 }
  0x17   :  { %397 = vmatpush3.bf16.msra.mxu1 %v394_v37 }
  0x18   :  { %399 = vmatprep.subr.bf16.mxu1 %v398_v41 }
  0x19   :  { %373 = vmatpush3.bf16.msra.mxu0 %v370_v18 }
  0x1a   :  { %375 = vmatprep.subr.bf16.mxu0 %v374_v21 }
  0x1b   :  { %401 = vmatpush3.bf16.msra.mxu1 %v398_v41 }
  0x1c   :  { %403 = vmatprep.subr.bf16.mxu1 %v402_v43 }
  0x1d   :  { %377 = vmatpush3.bf16.msra.mxu0 %v374_v21 }
  0x1e   :  { %379 = vmatprep.subr.bf16.mxu0 %v378_v24 }
  0x1f   :  { %405 = vmatpush3.bf16.msra.mxu1 %v402_v43 }
  0x20   :  { %407 = vmatprep.subr.bf16.mxu1 %v406_v46 }
  0x21   :  { %381 = vmatpush3.bf16.msra.mxu0 %v378_v24 }
  0x23   :  { %409 = vmatpush3.bf16.msra.mxu1 %v406_v46 }
  0x24   :  { %313 = vmatmul.mubr.f32.vlgmr.msra.gmra.mrb[0].mxu0 %v21_v25  ;;  %411 = vmatprep.subr.bf16.mxu1 %v410_v49 }
  0x27   :  { %413 = vmatpush3.bf16.msra.mxu1 %v410_v49 }
  0xf7   :  { %v314_v51 = vpop.f32.mrb[0].mxu0 }
  0xf8   :  { %v117_v52 = vadd.f32 %v314_v51, %v242_v50  ;;  %v111_v53 = vpop.f32.mrb[1].mxu0 }
  0xf9   :  { %v112_v54 = vadd.f32 %v242_v50, %v111_v53 }
  0xfa   :  { %v121_v55 = vmul.f32 %v117_v52, %v117_v52 }
  0xfb   :  { %v120_v56 = vmul.f32 %v112_v54, %v112_v54 }
  0xfc   :  { %v123_v57 = vmul.f32 %v121_v55, %v117_v52 }
  0xfd   :  { %v122_v58 = vmul.f32 %v120_v56, %v112_v54 }
  0xfe   :  { %v125_v59 = vmul.f32 0.044715, %v123_v57 }
  0xff   :  { %v124_v60 = vmul.f32 0.044715, %v122_v58 }
 0x100   :  { %v127_v61 = vadd.f32 %v125_v59, %v117_v52 }
 0x101   :  { %v126_v62 = vadd.f32 %v124_v60, %v112_v54 }
 0x102   :  { %v129_v63 = vmul.f32 0.7978846, %v127_v61 }
 0x103   :  { %v128_v0 = vmul.f32 0.7978846, %v126_v62 }
 0x104   :  { %414 = vtanh.f32 %v129_v63 }
 0x105   :  { %416 = vtanh.f32 %v128_v0 }
 0x10e   :  { %v415_v1 = vpop.eup %414 }
 0x10f   :  { %v417_v2 = vpop.eup %416  ;;  %v133_v3 = vadd.f32 1.0, %v415_v1 }
 0x110   :  { %v132_v4 = vadd.f32 1.0, %v417_v2 }
 0x111   :  { %v135_v5 = vmul.f32 0.5, %v133_v3 }
 0x112   :  { %v134_v6 = vmul.f32 0.5, %v132_v4 }
 0x113   :  { %v137_v8 = vmul.f32 %v135_v5, %v117_v52 }
 0x114   :  { %v136_v7 = vmul.f32 %v134_v6, %v112_v54 }
 0x116   :  { %347 = vmatprep.mubr.f32.mxu1 %v136_v7 }
 0x117   :  { %348 = vmatmul.mubr.f32.vlgmr.msra.gmra.mrb[0].mxu1 %v137_v8 }
 0x1ea   :  { %v349_v10 = vpop.f32.mrb[0].mxu1 }
 0x1eb   :  { %v233_v11 = vadd.f32 %v349_v10, %v243_v9  ;;  %v227_v12 = vpop.f32.mrb[1].mxu1 }
 0x1ec   :  { %v228_v13 = vadd.f32 %v243_v9, %v227_v12 }
 0x1ed   :  { %237 = vst [vmem:[%s567_s5 + $0x8] sm:$0xff] %v233_v11 }
 0x1ee   :  { %236 = vst [vmem:[%s567_s5] sm:$0xff] %v228_v13 }

</bundles_post_ra>
